<compile_context>
chip_gen: v7x
topology: tpu7x:2x2x1
jax: 0.10.0
libtpu: 0.0.40
codegen_flags: <defaults>
</compile_context>

<pallas_src>
import functools

import jax
import jax.numpy as jnp
from jax.experimental import pallas as pl
from jax.experimental.pallas import tpu as pltpu

HIDDEN = 128  # fc1 output width (matches the PyTorch module)


def _round_up(n, m):
    return ((n + m - 1) // m) * m


def _cdiv(a, b):
    return -(-a // b)


def actor_kernel(x_ref, w1_ref, b1_ref, w2_ref, b2_ref, out_ref):
    # fc1: Linear(state_num -> 128) + Tanh.  Cast x to the weight dtype so the
    # bf16 path runs native MXU passes; accumulation is always f32.
    x = x_ref[...].astype(w1_ref.dtype)
    h = jnp.dot(x, w1_ref[...], preferred_element_type=jnp.float32)
    h = jnp.tanh(h + b1_ref[...])                                 # (TILE_B, 128) f32

    # fc4: Linear(128 -> out_pad).  Padded lanes carry zero weights and a
    # -1e30 bias so they get ~0 softmax probability.
    logits = jnp.dot(h.astype(w2_ref.dtype), w2_ref[...],
                     preferred_element_type=jnp.float32)
    logits = logits + b2_ref[...]                                 # (TILE_B, out_pad)

    # Numerically stable softmax over the last dim (all f32).
    m = jnp.max(logits, axis=-1, keepdims=True)
    e = jnp.exp(logits - m)
    s = jnp.sum(e, axis=-1, keepdims=True)
    out_ref[...] = e * pl.reciprocal(s, approx=False)


@functools.partial(jax.jit, static_argnames=("action_num", "tile_b", "use_bf16"))
def actor_forward(x, w1_t, b1, w2_t_pad, b2_pad, *, action_num, tile_b=1024,
                  use_bf16=False):
    """x: (B, state_num) f32 (or bf16).
    w1_t: (state_num, 128), b1: (1, 128),
    w2_t_pad: (128, out_pad), b2_pad: (1, out_pad)  (lane-padded fc4 params).
    Returns (B, action_num) f32 probabilities.
    """
    B, state_num = x.shape
    hidden = w1_t.shape[1]
    out_pad = w2_t_pad.shape[1]

    if use_bf16:
        # Weights are tiny and VMEM-resident; casting them in the wrapper is
        # one-off.  x is cast *inside* the kernel (no extra HBM pass here).
        w1_t = w1_t.astype(jnp.bfloat16)
        w2_t_pad = w2_t_pad.astype(jnp.bfloat16)
        # Biases stay f32 (incl. the -1e30 padded-lane sentinel).

    # --- batch tiling ---------------------------------------------------
    # * tile_b is a multiple of 8 (sublane constraint on the x/out blocks).
    # * at least 2 grid steps whenever B > 8, so the "parallel" batch axis
    #   actually feeds both TensorCores on v7x (no-op on v5e/v6e).
    # * tile_b = round_up(cdiv(B, n_steps), 8) minimizes batch padding.
    tile_b = max(8, tile_b)
    n_steps = _cdiv(B, tile_b)
    if n_steps == 1 and B > 8:
        n_steps = 2
    tile_b = _round_up(_cdiv(B, n_steps), 8)
    b_pad = tile_b * n_steps
    if b_pad != B:
        x = jnp.pad(x, ((0, b_pad - B), (0, 0)))

    grid = (n_steps,)

    out = pl.pallas_call(
        actor_kernel,
        out_shape=jax.ShapeDtypeStruct((b_pad, out_pad), jnp.float32),
        grid=grid,
        in_specs=[
            # x: streamed per batch tile (double-buffered by the pipeline).
            pl.BlockSpec((tile_b, state_num), lambda i: (i, 0)),
            # Weights/biases: same block every step -> stay VMEM-resident.
            pl.BlockSpec((state_num, hidden), lambda i: (0, 0)),
            pl.BlockSpec((1, hidden), lambda i: (0, 0)),
            pl.BlockSpec((hidden, out_pad), lambda i: (0, 0)),
            pl.BlockSpec((1, out_pad), lambda i: (0, 0)),
        ],
        # Narrow (out_pad = 8) output block: HBM writeback is 32 B/row
        # instead of 512 B/row; the (tile_b, 8) DMA is still contiguous.
        out_specs=pl.BlockSpec((tile_b, out_pad), lambda i: (i, 0)),
        compiler_params=pltpu.CompilerParams(
            dimension_semantics=("parallel",),  # shard grid across v7x's 2 TCs
        ),
    )(x, w1_t, b1, w2_t_pad, b2_pad)

    # Drop batch padding and the (few) padded action lanes — cheap now that
    # the stored width is only out_pad (=8) lanes.
    return out[:B, :action_num]


def init_actor_params(key, state_num, action_num, hidden=HIDDEN):
    """Deterministic init mimicking PyTorch's default Linear init
    (uniform in +/- 1/sqrt(fan_in)).  Returns kernel-layout params:
    W1^T (state_num, hidden), b1 (1, hidden),
    W2^T lane-padded (hidden, out_pad), b2 lane-padded (1, out_pad),
    plus the unpadded W2^T / b2 for the pure-JAX reference."""
    k1, k2, k3, k4 = jax.random.split(key, 4)
    bound1 = 1.0 / jnp.sqrt(state_num)
    bound2 = 1.0 / jnp.sqrt(hidden)
    w1 = jax.random.uniform(k1, (hidden, state_num), jnp.float32, -bound1, bound1)
    b1 = jax.random.uniform(k2, (hidden,), jnp.float32, -bound1, bound1)
    w2 = jax.random.uniform(k3, (action_num, hidden), jnp.float32, -bound2, bound2)
    b2 = jax.random.uniform(k4, (action_num,), jnp.float32, -bound2, bound2)

    w1_t = w1.T                                   # (state_num, hidden)
    b1_row = b1.reshape(1, hidden)
    w2_t = w2.T                                   # (hidden, action_num)
    b2_row = b2.reshape(1, action_num)

    # Narrow lane padding of fc4 (action_num -> multiple of 8): zero weight
    # columns, -1e30 bias so the padded lanes get ~0 softmax probability.
    out_pad = _round_up(action_num, 8)
    w2_t_pad = jnp.zeros((hidden, out_pad), jnp.float32).at[:, :action_num].set(w2_t)
    b2_pad = jnp.full((1, out_pad), -1e30, jnp.float32).at[:, :action_num].set(b2_row)
    return w1_t, b1_row, w2_t_pad, b2_pad, w2_t, b2_row


def actor_reference(x, w1_t, b1, w2_t, b2):
    h = jnp.tanh(x @ w1_t + b1)
    logits = h @ w2_t + b2
    return jax.nn.softmax(logits, axis=-1)


if __name__ == "__main__":
    key = jax.random.PRNGKey(0)
    kx, kx2, kp = jax.random.split(key, 3)

    state_num, action_num = 16, 6
    w1_t, b1, w2_t_pad, b2_pad, w2_t, b2 = init_actor_params(kp, state_num, action_num)

    # Case 1: tiny batch (single grid step, tile_b clamps to 8), exact f32 path.
    x_small = jax.random.normal(kx, (8, state_num), jnp.float32)
    probs_small = actor_forward(x_small, w1_t, b1, w2_t_pad, b2_pad,
                                action_num=action_num)
    probs_small = jax.block_until_ready(probs_small)
    ref_small = actor_reference(x_small, w1_t, b1, w2_t, b2)
    assert probs_small.shape == (8, action_num)
    assert jnp.allclose(probs_small, ref_small, atol=1e-5, rtol=1e-5)
    assert jnp.allclose(jnp.sum(probs_small, axis=-1), 1.0, atol=1e-5)

    # Case 2: batch that exercises multiple pipelined grid steps + minimal
    # batch padding (B=300 -> 3 steps of 104 rows), exact f32 path.
    x_big = jax.random.normal(kx2, (300, state_num), jnp.float32)
    probs_big = actor_forward(x_big, w1_t, b1, w2_t_pad, b2_pad,
                              action_num=action_num, tile_b=128)
    probs_big = jax.block_until_ready(probs_big)
    ref_big = actor_reference(x_big, w1_t, b1, w2_t, b2)
    assert probs_big.shape == (300, action_num)
    assert jnp.allclose(probs_big, ref_big, atol=1e-5, rtol=1e-5)
    assert jnp.allclose(jnp.sum(probs_big, axis=-1), 1.0, atol=1e-5)

    # Case 3: bf16 MXU path (default tile_b -> forced 2 grid steps for v7x),
    # relaxed tolerance for the bf16 matmul rounding.
    probs_bf16 = actor_forward(x_big, w1_t, b1, w2_t_pad, b2_pad,
                               action_num=action_num, use_bf16=True)
    probs_bf16 = jax.block_until_ready(probs_bf16)
    assert probs_bf16.shape == (300, action_num)
    assert jnp.allclose(probs_bf16, ref_big, atol=2e-2)
    assert jnp.allclose(jnp.sum(probs_bf16, axis=-1), 1.0, atol=1e-5)

    print("KERNEL_OK")
</pallas_src>

<mosaic_0001>
module attributes {stable_mosaic.version = 11 : i64} {
  func.func @actor_kernel(%arg0: i32, %arg1: memref<8x16xf32, #tpu.memory_space<vmem>>, %arg2: memref<16x128xf32, #tpu.memory_space<vmem>>, %arg3: memref<1x128xf32, #tpu.memory_space<vmem>>, %arg4: memref<128x8xf32, #tpu.memory_space<vmem>>, %arg5: memref<1x8xf32, #tpu.memory_space<vmem>>, %arg6: memref<8x8xf32, #tpu.memory_space<vmem>>) attributes {dimension_semantics = [#tpu.dimension_semantics<parallel>], iteration_bounds = array<i64: 1>, scalar_prefetch = 0 : i64, scratch_operands = 0 : i64, tpu.core_type = #tpu.core_type<tc>, window_params = [{transform_indices = @transform_0, window_bounds = array<i64: 8, 16>}, {pipeline_mode = #tpu.pipeline_mode<synchronous>, transform_indices = @transform_1, window_bounds = array<i64: 16, 128>}, {pipeline_mode = #tpu.pipeline_mode<synchronous>, transform_indices = @transform_2, window_bounds = array<i64: 1, 128>}, {pipeline_mode = #tpu.pipeline_mode<synchronous>, transform_indices = @transform_3, window_bounds = array<i64: 128, 8>}, {pipeline_mode = #tpu.pipeline_mode<synchronous>, transform_indices = @transform_4, window_bounds = array<i64: 1, 8>}, {transform_indices = @transform_5, window_bounds = array<i64: 8, 8>}]} {
    %c0 = arith.constant 0 : index
    %c0_0 = arith.constant 0 : index
    %0 = vector.load %arg1[%c0, %c0_0] : memref<8x16xf32, #tpu.memory_space<vmem>>, vector<8x16xf32>
    %c0_1 = arith.constant 0 : index
    %c0_2 = arith.constant 0 : index
    %1 = vector.load %arg2[%c0_1, %c0_2] : memref<16x128xf32, #tpu.memory_space<vmem>>, vector<16x128xf32>
    %cst = arith.constant dense<0.000000e+00> : vector<8x128xf32>
    %2 = tpu.matmul %0, %1, %cst {dimension_numbers = #tpu.dot_dimension_numbers<[1], [0], [0], [1], [0, 0, 1, 1], [], []>} : vector<8x16xf32>, vector<16x128xf32>, vector<8x128xf32> -> vector<8x128xf32>
    %c0_3 = arith.constant 0 : index
    %c0_4 = arith.constant 0 : index
    %3 = vector.load %arg3[%c0_3, %c0_4] : memref<1x128xf32, #tpu.memory_space<vmem>>, vector<1x128xf32>
    %4 = vector.broadcast %3 : vector<1x128xf32> to vector<8x128xf32>
    %5 = arith.addf %2, %4 : vector<8x128xf32>
    %6 = math.tanh %5 : vector<8x128xf32>
    %c0_5 = arith.constant 0 : index
    %c0_6 = arith.constant 0 : index
    %7 = vector.load %arg4[%c0_5, %c0_6] : memref<128x8xf32, #tpu.memory_space<vmem>>, vector<128x8xf32>
    %cst_7 = arith.constant dense<0.000000e+00> : vector<8x8xf32>
    %8 = tpu.matmul %6, %7, %cst_7 {dimension_numbers = #tpu.dot_dimension_numbers<[1], [0], [0], [1], [0, 0, 1, 1], [], []>} : vector<8x128xf32>, vector<128x8xf32>, vector<8x8xf32> -> vector<8x8xf32>
    %c0_8 = arith.constant 0 : index
    %c0_9 = arith.constant 0 : index
    %9 = vector.load %arg5[%c0_8, %c0_9] : memref<1x8xf32, #tpu.memory_space<vmem>>, vector<1x8xf32>
    %10 = vector.broadcast %9 : vector<1x8xf32> to vector<8x8xf32>
    %11 = arith.addf %8, %10 : vector<8x8xf32>
    %cst_10 = arith.constant dense<0xFF800000> : vector<8xf32>
    %12 = vector.multi_reduction <maximumf>, %11, %cst_10 [1] : vector<8x8xf32> to vector<8xf32>
    %13 = vector.shape_cast %12 : vector<8xf32> to vector<8x1xf32>
    %14 = vector.broadcast %13 : vector<8x1xf32> to vector<8x8xf32>
    %15 = arith.subf %11, %14 : vector<8x8xf32>
    %16 = math.exp %15 : vector<8x8xf32>
    %cst_11 = arith.constant dense<0.000000e+00> : vector<8xf32>
    %17 = vector.multi_reduction <add>, %16, %cst_11 [1] : vector<8x8xf32> to vector<8xf32>
    %18 = vector.shape_cast %17 : vector<8xf32> to vector<8x1xf32>
    %19 = tpu.reciprocal %18 : vector<8x1xf32> -> vector<8x1xf32>
    %20 = vector.broadcast %19 : vector<8x1xf32> to vector<8x8xf32>
    %21 = arith.mulf %16, %20 : vector<8x8xf32>
    %c0_12 = arith.constant 0 : index
    %c0_13 = arith.constant 0 : index
    %22 = vector.load %arg6[%c0_12, %c0_13] : memref<8x8xf32, #tpu.memory_space<vmem>>, vector<8x8xf32>
    tpu.vector_store %arg6[%c0_12, %c0_13], %21 {strides = array<i32>} : memref<8x8xf32, #tpu.memory_space<vmem>>, vector<8x8xf32>,
    return
  }
  func.func @transform_0(%arg0: i32) -> (i32, i32) {
    %c0_i32 = arith.constant 0 : i32
    %c0_i32_0 = arith.constant 0 : i32
    return %arg0, %c0_i32 : i32, i32
  }
  func.func @transform_1(%arg0: i32) -> (i32, i32) {
    %c0_i32 = arith.constant 0 : i32
    %c0_i32_0 = arith.constant 0 : i32
    %c0_i32_1 = arith.constant 0 : i32
    return %c0_i32, %c0_i32_0 : i32, i32
  }
  func.func @transform_2(%arg0: i32) -> (i32, i32) {
    %c0_i32 = arith.constant 0 : i32
    %c0_i32_0 = arith.constant 0 : i32
    %c0_i32_1 = arith.constant 0 : i32
    return %c0_i32, %c0_i32_0 : i32, i32
  }
  func.func @transform_3(%arg0: i32) -> (i32, i32) {
    %c0_i32 = arith.constant 0 : i32
    %c0_i32_0 = arith.constant 0 : i32
    %c0_i32_1 = arith.constant 0 : i32
    return %c0_i32, %c0_i32_0 : i32, i32
  }
  func.func @transform_4(%arg0: i32) -> (i32, i32) {
    %c0_i32 = arith.constant 0 : i32
    %c0_i32_0 = arith.constant 0 : i32
    %c0_i32_1 = arith.constant 0 : i32
    return %c0_i32, %c0_i32_0 : i32, i32
  }
  func.func @transform_5(%arg0: i32) -> (i32, i32) {
    %c0_i32 = arith.constant 0 : i32
    %c0_i32_0 = arith.constant 0 : i32
    return %arg0, %c0_i32 : i32, i32
  }
}

</mosaic_0001>

<bundles_post_ra>
// kernel: actor_forward.1
= control target key start
LH: loop header
LB: loop body
LE: loop exit
PB: predicated region body
PF: predicated region fallthrough
CT: control target
= control target key end

     0   :  { %v352_v2 = vmov 0.0|0.0   ;;  %vm353_vm0 = vmmov 0   ;;  %v354_v4 = vmov 0.0   ;;  %vm31_vm1 = vcmask 130048   ;;  %s464_s0 = inlined_call_operand.vmem [shape: f32[8,16], index: 0, kind: input, shape index: {}]   ;;  %s465_s1 = inlined_call_operand.vmem [shape: f32[16,128], index: 1, kind: input, shape index: {}]   ;;  %s466_s2 = inlined_call_operand.vmem [shape: f32[1,128], index: 2, kind: input, shape index: {}]   ;;  %s467_s3 = inlined_call_operand.vmem [shape: f32[128,8], index: 3, kind: input, shape index: {}]   ;;  %s468_s4 = inlined_call_operand.vmem [shape: f32[1,8], index: 4, kind: input, shape index: {}]   ;;  %s469_s5 = inlined_call_operand.hbm [shape: f32[8,8], index: 5, kind: output, shape index: {}]  }
   0x1   :  { %v22_v0 = vld [vmem:[%s465_s1] sm:$0xff]  ;;  %v23_v1 = vld [vmem:[%s465_s1 + $0x8] sm:$0xff]  ;;  %291 = vmatprep.subr.bf16.mxu0 %v352_v2  ;;  %253 = vmatprep.mubr.msk.f32.mxu0 %vm353_vm0, %v354_v4  ;;  %v108_v7 = vld [vmem:[%s467_s3 + $0x10] sm:$0xff] }
   0x2   :  { %v292_v3 = vpack.c.bf16 %v23_v1, %v22_v0  ;;  %v106_v5 = vld [vmem:[%s467_s3] sm:$0xff]  ;;  %v107_v6 = vld [vmem:[%s467_s3 + $0x8] sm:$0xff]  ;;  %294 = vmatprep.subr.bf16.mxu1 %v352_v2  ;;  %v109_v9 = vld [vmem:[%s467_s3 + $0x18] sm:$0xff]  ;;  %288 = vmatprep.mubr.msk.f32.mxu1 %vm353_vm0, %v354_v4 }
   0x3   :  { %v295_v8 = vpack.c.bf16 %v107_v6, %v106_v5  ;;  %v21_v10 = vld [vmem:[%s464_s0] sm:$0xff]  ;;  %v298_v11 = vpack.c.bf16 %v109_v9, %v108_v7 }
   0x4   :  { %293 = vmatpush3.bf16.msra.mxu0 %v292_v3 }
   0x5   :  { %296 = vmatpush3.bf16.msra.mxu1 %v295_v8 }
   0x6   :  { %10 = vsyncpa [#allocation3], 0  ;;  %297 = vmatprep.subr.bf16.mxu1 %v352_v2  ;;  %v110_v12 = vld [vmem:[%s467_s3 + $0x20] sm:$0xff]  ;;  %v111_v13 = vld [vmem:[%s467_s3 + $0x28] sm:$0xff]  ;;  %vm199_vm2 = vcmask 64512  }
   0x7   :  { %254 = vmatmul.mubr.msk.f32.vlgmr.msra.gmra.mrb[0].mxu0 %vm31_vm1, %v21_v10  ;;  %v301_v14 = vpack.c.bf16 %v111_v13, %v110_v12  ;;  %v112_v15 = vld [vmem:[%s467_s3 + $0x30] sm:$0xff]  ;;  %v113_v16 = vld [vmem:[%s467_s3 + $0x38] sm:$0xff]  ;;  %v114_v18 = vld [vmem:[%s467_s3 + $0x40] sm:$0xff] }
   0x8   :  { %v304_v17 = vpack.c.bf16 %v113_v16, %v112_v15  ;;  %v115_v19 = vld [vmem:[%s467_s3 + $0x48] sm:$0xff]  ;;  %v116_v21 = vld [vmem:[%s467_s3 + $0x50] sm:$0xff]  ;;  %v117_v22 = vld [vmem:[%s467_s3 + $0x58] sm:$0xff] }
   0x9   :  { %299 = vmatpush3.bf16.msra.mxu1 %v298_v11  ;;  %v307_v20 = vpack.c.bf16 %v115_v19, %v114_v18  ;;  %v310_v23 = vpack.c.bf16 %v117_v22, %v116_v21  ;;  %v118_v24 = vld [vmem:[%s467_s3 + $0x60] sm:$0xff]  ;;  %v119_v25 = vld [vmem:[%s467_s3 + $0x68] sm:$0xff]  ;;  %v120_v27 = vld [vmem:[%s467_s3 + $0x70] sm:$0xff] }
   0xa   :  { %300 = vmatprep.subr.bf16.mxu1 %v352_v2  ;;  %v313_v26 = vpack.c.bf16 %v119_v25, %v118_v24  ;;  %v121_v28 = vld [vmem:[%s467_s3 + $0x78] sm:$0xff]  ;;  %v226_v30 = vld [vmem:[%s466_s2] ss:$0 sm:$0xff]  ;;  %s355_s2 = smov [#allocation2]  }
   0xb   :  { %v316_v29 = vpack.c.bf16 %v121_v28, %v120_v27  ;;  %v228_v35 = vld [vmem:[%s468_s4] ss:$0 sm:$0xff]  ;;  %s218_s3 = sshll.u32 %s355_s2, 4  ;;  %s219_s3 = int_to_ptr.vmem [resolvable:$true] %s218_s3 }
   0xc   :  { %s328_s4 = scalar_lea.vmem %s219_s3, 128  ;;  %p333_p1 = scmp.lt.s32.totalorder %s219_s3, %s219_s3 }
   0xd   :  { %302 = vmatpush3.bf16.msra.mxu1 %v301_v14  ;;  %p329_p0 = scmp.ne.s32.totalorder %s219_s3, %s328_s4  ;;  %p334_p2 = scmp.lt.s32.totalorder %s328_s4, %s328_s4 }
   0xe   :  { %303 = vmatprep.subr.bf16.mxu1 %v352_v2 }
   0xf   :  { %p335_p3 = por %p334_p2, %p333_p1 }
  0x11   :  { %305 = vmatpush3.bf16.msra.mxu1 %v304_v17  ;;  %p336_p4 = pnand %p335_p3, %p329_p0 }
  0x12   :  { %306 = vmatprep.subr.bf16.mxu1 %v352_v2 }
  0x15   :  { %308 = vmatpush3.bf16.msra.mxu1 %v307_v20 }
  0x16   :  { %309 = vmatprep.subr.bf16.mxu1 %v352_v2 }
  0x19   :  { %311 = vmatpush3.bf16.msra.mxu1 %v310_v23 }
  0x1a   :  { %312 = vmatprep.subr.bf16.mxu1 %v352_v2 }
  0x1d   :  { %314 = vmatpush3.bf16.msra.mxu1 %v313_v26 }
  0x1e   :  { %315 = vmatprep.subr.bf16.mxu1 %v352_v2 }
  0x21   :  { %317 = vmatpush3.bf16.msra.mxu1 %v316_v29 }
  0xda   :  { %v101_v31 = vpop.f32.mrb[0].mxu0 }
  0xdb   :  { %v102_v32 = vadd.f32 %v226_v30, %v101_v31  ;;  %v255_v33 = vpop.f32.mrb[1].mxu0 }
  0xdd   :  { %322 = vtanh.f32 %v102_v32 }
  0xe7   :  { %v323_v34 = vpop.eup %322 }
  0xe8   :  { %289 = vmatmul.mubr.f32.vlgmr.msra.gmra.mrb[0].mxu1 %v323_v34 }
 0x1bb   :  { %v195_v36 = vpop.f32.mrb[0].mxu1 }
 0x1bc   :  { %v196_v37 = vadd.f32 %v228_v35, %v195_v36  ;;  %v290_v38 = vpop.f32.mrb[1].mxu1 }
 0x1be   :  { %v200_v39 = vsel %vm199_vm2, %v196_v37, -inf }
 0x1bf   :  { %201 = vmax.xlane.f32.xlu0 %v200_v39 }
 0x24c   :  { %v202_v40 = vpop.xlane.xlu0 %201 }
 0x24d   :  { %v203_v41 = vsub.f32 %v196_v37, %v202_v40 }
 0x24f   :  { %v204_v42 = vmul.f32 1.442695, %v203_v41 }
 0x251   :  { %324 = vpow2.f32 %v204_v42 }
 0x25b   :  { %v325_v43 = vpop.eup %324 }
 0x25c   :  { %v206_v44 = vsel %vm199_vm2, %v325_v43, 0.0 }
 0x25d   :  { %207 = vadd.xlane.f32.xlu0 %v206_v44 }
 0x2ea   :  { %v208_v45 = vpop.xlane.xlu0 %207 }
 0x2eb   :  { %326 = vrcp.f32 %v208_v45 }
 0x2f5   :  { %v327_v46 = vpop.eup %326 }
 0x2f6   :  { %v210_v47 = vmul.f32 %v327_v46, %v325_v43 }
 0x2f8   :  { %211 = vst.msk [vmem:[#allocation2] sm:$0xff] %vm199_vm2, %v210_v47 }
 0x2f9   :  { %339 = shalt.err (!%p336_p4)
}
 0x2fa   :  { %s340_s9 = scalar_lea.hbm %s469_s5, 128 }
 0x2fb   :  { %p341_p5 = scmp.ne.s32.totalorder %s469_s5, %s340_s9  ;;  %p344_p6 = scmp.lt.u32.totalorder %s340_s9, %s469_s5 }
 0x2fd   :  { %p346_p7 = pnand %p344_p6, %p341_p5 }
 0x2ff   :  { %349 = shalt.err (!%p346_p7)
}
 0x300   :  { %221 = dma.vmem_to_hbm [thread:$0]  %s219_s3, 128, %s469_s5, [#allocation3]  }
 0x301   :  { %350 = dma.done.wait [#allocation3], 128  }
 0x302   :  { %351 = vsyncadd [#allocation3], 4294967168 }
 0x303   :  { %225 = vsyncpa [#allocation3], 1 }

</bundles_post_ra>
